<compile_context>
chip_gen: v5e
topology: v5e:2x2
jax: 0.10.0
libtpu: 0.0.40
codegen_flags: <defaults>
</compile_context>

<pallas_src>
import functools

import numpy as np
import jax
import jax.numpy as jnp
from jax.experimental import pallas as pl
from jax.experimental.pallas import tpu as pltpu


LEAKY_SLOPE = 0.2
BN_EPS = 1e-5
START_CHANNELS = 4 * 128          # 512
LINEAR_OUT = 4 * 2048             # 8192
LANE = 128


def _round_up(x, m):
    return (x + m - 1) // m * m


def _pad_last(a, target):
    pad = target - a.shape[-1]
    if pad == 0:
        return a
    cfg = [(0, 0)] * (a.ndim - 1) + [(0, pad)]
    return jnp.pad(a, cfg)


# ----------------------------------------------------------------------------
# pltpu.roll direction probe (resolved once, eagerly, before any jit tracing)
# ----------------------------------------------------------------------------
_ROLL_LIKE_JNP = None


def _roll_like_jnp():
    """True if pltpu.roll follows jnp.roll semantics (out[i] = x[i - shift])."""
    global _ROLL_LIKE_JNP
    if _ROLL_LIKE_JNP is None:
        x = jnp.arange(8 * 128, dtype=jnp.float32).reshape(8, 128)

        def k(x_ref, o_ref):
            o_ref[...] = pltpu.roll(x_ref[...], shift=1, axis=0)

        got = pl.pallas_call(
            k, out_shape=jax.ShapeDtypeStruct((8, 128), jnp.float32))(x)
        _ROLL_LIKE_JNP = bool(jnp.array_equal(got, jnp.roll(x, 1, axis=0)))
    return _ROLL_LIKE_JNP


def _row_shift(x, s):
    """y[i, :] = x[(i + s) mod M, :] — sublane rotation on the XLU."""
    m = x.shape[0]
    s = s % m
    if s == 0:
        return x
    shift = (m - s) % m if _roll_like_jnp() else s
    return pltpu.roll(x, shift=shift, axis=0)


# ----------------------------------------------------------------------------
# Pallas kernels
# ----------------------------------------------------------------------------
def _linear_relu_kernel(x_ref, w_ref, b_ref, o_ref):
    acc = jnp.dot(x_ref[...], w_ref[...], preferred_element_type=jnp.float32)
    acc = jnp.maximum(acc + b_ref[...], 0.0)
    o_ref[...] = acc.astype(o_ref.dtype)


def linear_relu(x, w, b, *, tn=2048):
    """(M, K) @ (K, N) + b, ReLU, bf16 output.  (M-tile, N-tile) grid."""
    M, K = x.shape
    K2, N = w.shape
    assert K == K2 and N % tn == 0
    tm = M if M <= 512 else 512           # bounded tile; ragged tail is clamped
    grid = (pl.cdiv(M, tm), N // tn)
    return pl.pallas_call(
        _linear_relu_kernel,
        out_shape=jax.ShapeDtypeStruct((M, N), jnp.bfloat16),
        grid_spec=pltpu.PrefetchScalarGridSpec(
            num_scalar_prefetch=0,
            grid=grid,
            in_specs=[
                pl.BlockSpec((tm, K), lambda i, j: (i, 0)),
                pl.BlockSpec((K, tn), lambda i, j: (0, j)),
                pl.BlockSpec((1, tn), lambda i, j: (0, j)),
            ],
            out_specs=pl.BlockSpec((tm, tn), lambda i, j: (i, j)),
        ),
        compiler_params=pltpu.CompilerParams(
            dimension_semantics=("parallel", "parallel")),
    )(x.astype(jnp.bfloat16), w, b.reshape(1, N))


def _conv3x3_flat(v, w_ref, b_ref, H, W):
    """3x3 'same' conv on a flattened activation.

    v: (M, Cin) f32, M = nb*H*W rows (nb images, row-major spatial).
    Taps are produced with sublane rolls + border masks (no data copies);
    9 MXU matmuls accumulate in f32 with a plain `acc + dot` chain.
    """
    M = v.shape[0]
    HW = H * W
    cout = w_ref.shape[-1]
    # H, W are powers of two -> mod via bitwise AND (no vector int division).
    i = jax.lax.broadcasted_iota(jnp.int32, (M, 1), 0)
    r = jnp.bitwise_and(i, HW - 1)          # index within image
    xc = jnp.bitwise_and(i, W - 1)          # column within row

    acc = jnp.zeros((M, cout), jnp.float32)
    for dy in range(3):
        for dx in range(3):
            s = (dy - 1) * W + (dx - 1)
            tap = v if s == 0 else _row_shift(v, s)
            tap = tap.astype(jnp.bfloat16)
            conds = []
            if dy == 0:
                conds.append(r >= W)
            elif dy == 2:
                conds.append(r < (H - 1) * W)
            if dx == 0:
                conds.append(xc >= 1)
            elif dx == 2:
                conds.append(xc < W - 1)
            if conds:
                m = conds[0]
                for c_ in conds[1:]:
                    m = jnp.logical_and(m, c_)
                tap = jnp.where(m, tap, jnp.zeros_like(tap))
            acc = acc + jnp.dot(tap, w_ref[dy * 3 + dx],
                                preferred_element_type=jnp.float32)
    return acc + b_ref[...]


def _conv_block_kernel(x_ref, sc_ref, sh_ref, w_ref, b_ref,
                       y_ref, s_ref, sq_ref, *, H, W):
    """Per grid step: prev-layer BN affine + LeakyReLU -> conv3x3 + bias.
    Also emits per-step BN sum / sum-of-squares of the pre-BN output."""
    x = x_ref[...].astype(jnp.float32)                 # (M, Cin)
    v = x * sc_ref[...] + sh_ref[...]
    v = jnp.where(v > 0, v, LEAKY_SLOPE * v)
    acc = _conv3x3_flat(v, w_ref, b_ref, H, W)         # (M, Cout) f32
    y_ref[...] = acc.astype(y_ref.dtype)
    s_ref[...] = jnp.sum(acc, axis=0, keepdims=True)
    sq_ref[...] = jnp.sum(acc * acc, axis=0, keepdims=True)


def _head_kernel(x_ref, sc_ref, sh_ref,
                 w1_ref, b1_ref, w2_ref, b2_ref, w3_ref, b3_ref,
                 o_ref, *, H, W):
    """Per grid step: last-block BN affine + LeakyReLU, then the whole decoder
    head (conv -> leaky -> conv -> leaky -> conv -> sigmoid), 128-lane dense."""
    x = x_ref[...].astype(jnp.float32)
    v = x * sc_ref[...] + sh_ref[...]
    v = jnp.where(v > 0, v, LEAKY_SLOPE * v)

    a = _conv3x3_flat(v, w1_ref, b1_ref, H, W)
    a = jnp.where(a > 0, a, LEAKY_SLOPE * a)
    a = _conv3x3_flat(a, w2_ref, b2_ref, H, W)
    a = jnp.where(a > 0, a, LEAKY_SLOPE * a)
    a = _conv3x3_flat(a, w3_ref, b3_ref, H, W)
    # sigmoid = 1 / (1 + exp(-a)): exp + approximate reciprocal both on the EUP
    o_ref[...] = pl.reciprocal(1.0 + jnp.exp(-a), approx=True).astype(o_ref.dtype)


def _pick_batch(nimg, hw, target_rows=1024):
    """Images per grid step: fill the MXU M-dim, divisor of nimg, and prefer an
    even grid for v7x's two TensorCores when it keeps M >= 256 rows."""
    nb = max(1, min(nimg, target_rows // max(hw, 1)))
    while nimg % nb:
        nb -= 1
    if nimg // nb == 1 and nb % 2 == 0 and (nb // 2) * hw >= 256:
        nb //= 2
    return nb


def conv_block(x_flat, scale, shift, w9, b, nimg, H, W):
    """x_flat: (nimg*H*W, Cin) bf16 (pre-BN of prev layer, already upsampled).
    Returns (y pre-BN conv output bf16, per-step sum, per-step sum-of-squares)."""
    M, Cin = x_flat.shape
    Cout = w9.shape[-1]
    HW = H * W
    assert M == nimg * HW
    nb = _pick_batch(nimg, HW)
    mb = nb * HW
    grid = (nimg // nb,)
    kernel = functools.partial(_conv_block_kernel, H=H, W=W)
    return pl.pallas_call(
        kernel,
        out_shape=(
            jax.ShapeDtypeStruct((M, Cout), jnp.bfloat16),
            jax.ShapeDtypeStruct((grid[0], Cout), jnp.float32),
            jax.ShapeDtypeStruct((grid[0], Cout), jnp.float32),
        ),
        grid_spec=pltpu.PrefetchScalarGridSpec(
            num_scalar_prefetch=0,
            grid=grid,
            in_specs=[
                pl.BlockSpec((mb, Cin), lambda g: (g, 0)),
                pl.BlockSpec((1, Cin), lambda g: (0, 0)),
                pl.BlockSpec((1, Cin), lambda g: (0, 0)),
                pl.BlockSpec((9, Cin, Cout), lambda g: (0, 0, 0)),
                pl.BlockSpec((1, Cout), lambda g: (0, 0)),
            ],
            out_specs=(
                pl.BlockSpec((mb, Cout), lambda g: (g, 0)),
                pl.BlockSpec((1, Cout), lambda g: (g, 0)),
                pl.BlockSpec((1, Cout), lambda g: (g, 0)),
            ),
        ),
        compiler_params=pltpu.CompilerParams(
            dimension_semantics=("parallel",)),
    )(x_flat, scale, shift, w9, b)


def decoder_head(x_flat, scale, shift, head_w, head_b, nimg, H, W):
    M, C = x_flat.shape
    HW = H * W
    nb = _pick_batch(nimg, HW)
    mb = nb * HW
    grid = (nimg // nb,)
    kernel = functools.partial(_head_kernel, H=H, W=W)
    wspec = pl.BlockSpec((9, C, C), lambda g: (0, 0, 0))
    vspec = pl.BlockSpec((1, C), lambda g: (0, 0))
    return pl.pallas_call(
        kernel,
        out_shape=jax.ShapeDtypeStruct((M, C), jnp.bfloat16),
        grid_spec=pltpu.PrefetchScalarGridSpec(
            num_scalar_prefetch=0,
            grid=grid,
            in_specs=[pl.BlockSpec((mb, C), lambda g: (g, 0)),
                      vspec, vspec,
                      wspec, vspec, wspec, vspec, wspec, vspec],
            out_specs=pl.BlockSpec((mb, C), lambda g: (g, 0)),
        ),
        compiler_params=pltpu.CompilerParams(
            dimension_semantics=("parallel",)),
    )(x_flat, scale, shift,
      head_w[0], head_b[0], head_w[1], head_b[1], head_w[2], head_b[2])


# ----------------------------------------------------------------------------
# Parameters (deterministic synthetic init — shapes from ImageDecoder.__init__)
# ----------------------------------------------------------------------------
def build_params(key, input_dim, img_shape):
    c, w, h = img_shape
    assert w == h
    keys = iter(jax.random.split(key, 64))
    params = {}
    params["lin_w"] = (jax.random.normal(next(keys), (input_dim, LINEAR_OUT), jnp.float32)
                       / np.sqrt(input_dim)).astype(jnp.bfloat16)
    params["lin_b"] = 0.01 * jax.random.normal(next(keys), (LINEAR_OUT,), jnp.float32)

    blocks = []
    ch = START_CHANNELS
    size_upper_bound = int(np.log2(w)) - 2 + 1
    for _ in range(size_upper_bound):
        out_ch = max(4, ch // 2)
        blocks.append(dict(
            w=(jax.random.normal(next(keys), (3, 3, ch, out_ch), jnp.float32)
               / np.sqrt(9 * ch)).astype(jnp.bfloat16),
            b=0.01 * jax.random.normal(next(keys), (out_ch,), jnp.float32),
            gamma=1.0 + 0.1 * jax.random.normal(next(keys), (out_ch,), jnp.float32),
            beta=0.1 * jax.random.normal(next(keys), (out_ch,), jnp.float32),
        ))
        ch = out_ch
    params["blocks"] = blocks

    head = []
    for cin, cout in [(ch, c), (c, 10), (10, c)]:
        head.append((
            (jax.random.normal(next(keys), (3, 3, cin, cout), jnp.float32)
             / np.sqrt(9 * cin)).astype(jnp.bfloat16),
            0.01 * jax.random.normal(next(keys), (cout,), jnp.float32),
        ))
    params["head"] = head
    return params


def prepare_params(params, img_shape):
    """Kernel-friendly layout: NHWC-permuted linear, lane-padded conv channels."""
    _roll_like_jnp()          # resolve the roll convention eagerly (outside jit)
    c, _, _ = img_shape
    # permute linear output columns: new col p*512 + ch  <-  old col ch*16 + p
    perm = (np.arange(START_CHANNELS)[None, :] * 16
            + np.arange(16)[:, None]).reshape(-1)
    prep = {"lin_w": params["lin_w"][:, perm],
            "lin_b": params["lin_b"][perm]}

    blocks = []
    cin_p = START_CHANNELS
    for blk in params["blocks"]:
        cin, cout = blk["w"].shape[2], blk["w"].shape[3]
        cout_p = _round_up(max(cout, LANE), LANE)       # lane-dense Cout
        w9 = jnp.zeros((9, cin_p, cout_p), jnp.bfloat16)
        w9 = w9.at[:, :cin, :cout].set(blk["w"].reshape(9, cin, cout))
        b = jnp.zeros((1, cout_p), jnp.float32).at[0, :cout].set(blk["b"])
        gamma = jnp.zeros((cout_p,), jnp.float32).at[:cout].set(blk["gamma"])
        beta = jnp.zeros((cout_p,), jnp.float32).at[:cout].set(blk["beta"])
        blocks.append(dict(w=w9, b=b, gamma=gamma, beta=beta))
        cin_p = cout_p
    prep["blocks"] = blocks

    C = _round_up(max(cin_p, c, 10), LANE)              # lane-dense head width
    head_w, head_b = [], []
    for wk, bk in params["head"]:
        ci, co = wk.shape[2], wk.shape[3]
        w9 = jnp.zeros((9, C, C), jnp.bfloat16).at[:, :ci, :co].set(
            wk.reshape(9, ci, co))
        b9 = jnp.zeros((1, C), jnp.float32).at[0, :co].set(bk)
        head_w.append(w9)
        head_b.append(b9)
    prep["head_w"], prep["head_b"], prep["head_C"] = head_w, head_b, C
    return prep


# ----------------------------------------------------------------------------
# Forward pass (Pallas path)
# ----------------------------------------------------------------------------
def image_decoder_forward(x, prep, img_shape):
    c, w, h = img_shape
    assert w == h and (w & (w - 1)) == 0, "power-of-two image sizes"
    sh = x.shape
    assert x.ndim == 3, "module's output reshape implies (B, T, input_dim) input"
    xf = x.reshape(-1, sh[-1])
    nimg = xf.shape[0]

    # Linear + ReLU.  Columns are pre-permuted -> NHWC reshape, no transpose.
    hid = linear_relu(xf, prep["lin_w"], prep["lin_b"])          # (nimg, 8192)
    cur_h = cur_w = 4
    cur_c = START_CHANNELS
    feat = hid.reshape(nimg * cur_h * cur_w, cur_c)

    # first conv block sees the (non-negative) ReLU output: identity affine
    scale = jnp.ones((1, cur_c), jnp.float32)
    shift = jnp.zeros((1, cur_c), jnp.float32)

    for blk in prep["blocks"]:
        # TODO(synk): nearest 2x upsample kept as XLA glue on the pre-BN tensor
        # (per-channel affine + leaky commute with it and are applied in-kernel).
        feat = feat.reshape(nimg, cur_h, cur_w, cur_c)
        feat = jnp.repeat(jnp.repeat(feat, 2, axis=1), 2, axis=2)
        cur_h, cur_w = 2 * cur_h, 2 * cur_w
        feat = feat.reshape(nimg * cur_h * cur_w, cur_c)

        cout = blk["w"].shape[-1]
        feat, s, sq = conv_block(feat, scale, shift, blk["w"], blk["b"],
                                 nimg, cur_h, cur_w)
        cnt = float(nimg * cur_h * cur_w)
        mean = jnp.sum(s, axis=0) / cnt
        # NOTE: E[x^2]-E[x]^2 in f32; fine at 5e-2 tolerance / these sizes.
        var = jnp.maximum(jnp.sum(sq, axis=0) / cnt - mean * mean, 0.0)
        scale_v = blk["gamma"] * jax.lax.rsqrt(var + BN_EPS)
        shift_v = blk["beta"] - mean * scale_v
        scale = scale_v.reshape(1, cout)
        shift = shift_v.reshape(1, cout)
        cur_c = cout

    # Interpolate(size=(w, h)), nearest, on the pre-BN tensor (XLA gather).
    feat = feat.reshape(nimg, cur_h, cur_w, cur_c)
    rows = (np.arange(h) * cur_h) // h
    cols = (np.arange(w) * cur_w) // w
    feat = feat[:, rows][:, :, cols]
    cur_h, cur_w = h, w
    feat = feat.reshape(nimg * cur_h * cur_w, cur_c)

    # Lane-dense fused head (last-block BN+leaky, 3 convs, leakys, sigmoid).
    C = prep["head_C"]
    if cur_c != C:
        feat = _pad_last(feat, C)
        scale = _pad_last(scale, C)
        shift = _pad_last(shift, C)
    out = decoder_head(feat, scale, shift, prep["head_w"], prep["head_b"],
                       nimg, cur_h, cur_w)

    out = out[:, :c].astype(jnp.float32).reshape(nimg, cur_h, cur_w, c)
    out_nchw = out.transpose(0, 3, 1, 2)
    return out_nchw.reshape(sh[0], sh[1], *out_nchw.shape[1:])


# ----------------------------------------------------------------------------
# Pure-JAX reference (f32 activations, same bf16-rounded weights)
# ----------------------------------------------------------------------------
def reference_forward(x, params, img_shape):
    c, w, h = img_shape
    sh = x.shape
    xf = x.reshape(-1, sh[-1])

    def conv(a, wk, bk):
        return jax.lax.conv_general_dilated(
            a, wk.astype(jnp.float32), (1, 1), "SAME",
            dimension_numbers=("NHWC", "HWIO", "NHWC"),
            precision=jax.lax.Precision.HIGHEST) + bk

    def leaky(a):
        return jnp.where(a > 0, a, LEAKY_SLOPE * a)

    hid = jnp.maximum(
        jnp.dot(xf, params["lin_w"].astype(jnp.float32),
                precision=jax.lax.Precision.HIGHEST) + params["lin_b"], 0.0)
    feat = hid.reshape(-1, START_CHANNELS, 4, 4).transpose(0, 2, 3, 1)
    for blk in params["blocks"]:
        feat = jnp.repeat(jnp.repeat(feat, 2, axis=1), 2, axis=2)
        feat = conv(feat, blk["w"], blk["b"])
        mean = feat.mean(axis=(0, 1, 2))
        var = feat.var(axis=(0, 1, 2))                  # biased, train-mode BN
        feat = (feat - mean) * jax.lax.rsqrt(var + BN_EPS) * blk["gamma"] + blk["beta"]
        feat = leaky(feat)
    H, W = feat.shape[1], feat.shape[2]
    rows = (np.arange(h) * H) // h
    cols = (np.arange(w) * W) // w
    feat = feat[:, rows][:, :, cols]
    (w1, b1), (w2, b2), (w3, b3) = params["head"]
    feat = leaky(conv(feat, w1, b1))
    feat = leaky(conv(feat, w2, b2))
    feat = jax.nn.sigmoid(conv(feat, w3, b3))
    out = feat.transpose(0, 3, 1, 2)
    return out.reshape(sh[0], sh[1], *out.shape[1:])


if __name__ == "__main__":
    # TODO(synk): AutoEncoders.encoder is an arbitrary external module; the Pallas
    # path starts from the flattened latent that ImageDecoder consumes.
    input_dim = 32
    img_shape = (3, 8, 8)          # (c, w, h); w == h
    B, T = 2, 2

    key = jax.random.PRNGKey(0)
    kp, kx = jax.random.split(key)
    params = build_params(kp, input_dim, img_shape)
    prep = prepare_params(params, img_shape)      # also resolves roll convention
    x = jax.random.normal(kx, (B, T, input_dim), jnp.float32)

    fwd = jax.jit(lambda inp: image_decoder_forward(inp, prep, img_shape))
    out = jax.block_until_ready(fwd(x))

    assert out.shape == (B, T, img_shape[0], img_shape[2], img_shape[1]), out.shape

    ref = reference_forward(x, params, img_shape)
    err = float(jnp.max(jnp.abs(out - ref)))
    assert err < 5e-2, f"max abs error vs reference: {err}"

    print("KERNEL_OK")
</pallas_src>

<mosaic_0001>
module attributes {stable_mosaic.version = 11 : i64} {
  func.func @k(%arg0: memref<8x128xf32, #tpu.memory_space<vmem>>, %arg1: memref<8x128xf32, #tpu.memory_space<vmem>>) attributes {dimension_semantics = [], scalar_prefetch = 0 : i64, scratch_operands = 0 : i64, tpu.core_type = #tpu.core_type<tc>} {
    %c0 = arith.constant 0 : index
    %c0_0 = arith.constant 0 : index
    %0 = vector.load %arg0[%c0, %c0_0] : memref<8x128xf32, #tpu.memory_space<vmem>>, vector<8x128xf32>
    %c1_i32 = arith.constant 1 : i32
    %1 = tpu.dynamic_rotate %0 by %c1_i32 dim 0 : vector<8x128xf32>, i32 -> vector<8x128xf32>
    %c0_1 = arith.constant 0 : index
    %c0_2 = arith.constant 0 : index
    %2 = vector.load %arg1[%c0_1, %c0_2] : memref<8x128xf32, #tpu.memory_space<vmem>>, vector<8x128xf32>
    tpu.vector_store %arg1[%c0_1, %c0_2], %1 {strides = array<i32>} : memref<8x128xf32, #tpu.memory_space<vmem>>, vector<8x128xf32>,
    return
  }
}

</mosaic_0001>

<bundles_post_ra>
// kernel: tpu_custom_call.1
= control target key start
LH: loop header
LB: loop body
LE: loop exit
PB: predicated region body
PF: predicated region fallthrough
CT: control target
= control target key end

     0   :  { %6 = vsyncpa [#allocation3], 0  ;;  %s115_s0 = inlined_call_operand.hbm [shape: f32[8,128], index: 0, kind: input, shape index: {}]   ;;  %s116_s1 = inlined_call_operand.hbm [shape: f32[8,128], index: 1, kind: output, shape index: {}]  }
   0x1   :  { %7 = vsyncpa [#allocation4], 0  ;;  %s13_s8 = sshll.u32 %s115_s0, 4  ;;  %s97_s9 = smov [#allocation2]   ;;  %s14_s8 = int_to_ptr.hbm [resolvable:$true] %s13_s8 }
   0x2   :  { %s15_s10 = sshll.u32 %s97_s9, 4  ;;  %s16_s10 = int_to_ptr.vmem [resolvable:$true] %s15_s10 }
   0x3   :  { %18 = dma.hbm_to_vmem [thread:$0]  %s14_s8, 128, %s16_s10, [#allocation3]  }
   0x4   :  { %93 = dma.done.wait [#allocation3], 128  }
   0x5   :  { %94 = vsyncadd [#allocation3], 4294967168  ;;  %s98_s11 = smov [#allocation5]   ;;  %s33_s15 = sshll.u32 %s116_s1, 4  ;;  %v23_v0 = vld [vmem:[#allocation2] sm:$0xff]  ;;  %s34_s15 = int_to_ptr.hbm [resolvable:$true] %s33_s15 }
   0x6   :  { %s31_s12 = sshll.u32 %s98_s11, 4  ;;  %v24_v1 = vrot.slane %v23_v0, 7  ;;  %s32_s12 = int_to_ptr.vmem [resolvable:$true] %s31_s12 }
   0x8   :  { %25 = vst [vmem:[#allocation5] sm:$0xff] %v24_v1 }
   0x9   :  { %36 = dma.vmem_to_hbm [thread:$0]  %s32_s12, 128, %s34_s15, [#allocation4]  }
   0xa   :  { %95 = dma.done.wait [#allocation4], 128  }
   0xb   :  { %96 = vsyncadd [#allocation4], 4294967168 }
   0xc   :  { %41 = vsyncpa [#allocation3], 1 }
   0xd   :  { %42 = vsyncpa [#allocation4], 1 }

</bundles_post_ra>
